<compile_context>
chip_gen: v5e
topology: v5e:2x2
jax: 0.10.0
libtpu: 0.0.40
codegen_flags: <defaults>
</compile_context>

<pallas_src>
import math
from collections import OrderedDict
from functools import partial

import jax
import jax.numpy as jnp
from jax.experimental import pallas as pl
from jax.experimental.pallas import tpu as pltpu  # noqa: F401  (TPU backend module)

# Transformer hyper-params fixed by BeginningBuildOrderEncoder.__init__:
HEAD_NUM = 2       # Transformer default head_num
HEAD_DIM = 16      # given
HIDDEN_DIM = 64    # given
TRANS_OUT = 64     # given (embedding / per-layer dim)
LAYER_NUM = 3      # Transformer default layer_num
BO_SEQ_LEN = 20    # "B, 20, N1" sequence length


# ----------------------------- Pallas kernels -----------------------------

def _fc_kernel(x_ref, w_ref, b_ref, o_ref, *, relu):
    y = jnp.dot(x_ref[...], w_ref[...], preferred_element_type=jnp.float32) + b_ref[...]
    if relu:
        y = jnp.maximum(y, 0.0)
    o_ref[...] = y


def fc(x, w, b, relu=True):
    """y = act(x @ w + b); whole arrays VMEM-resident, one launch."""
    M, K = x.shape
    N = w.shape[1]
    return pl.pallas_call(
        partial(_fc_kernel, relu=relu),
        out_shape=jax.ShapeDtypeStruct((M, N), jnp.float32),
    )(x, w, b.reshape(1, N))


def _bo_kernel(x_ref, mask_ref, avg_ref,
               emb_w, emb_b, qw, qb, kw, kb, vw, vb, pw, pb,
               ln1g, ln1b, m0w, m0b, m1w, m1b, ln2g, ln2b, ef_w, ef_b,
               o_ref, *, L, H, hd):
    """Fused BeginningBuildOrderEncoder (emb + 3 transformer layers + mean + fc)."""
    f32 = jnp.float32
    mm = lambda a, b: jnp.dot(a, b, preferred_element_type=f32)

    def layer_norm(y, g, b):
        mu = jnp.mean(y, axis=-1, keepdims=True)
        var = jnp.mean((y - mu) ** 2, axis=-1, keepdims=True)
        return (y - mu) * jax.lax.rsqrt(var + 1e-5) * g + b

    scale = 1.0 / math.sqrt(hd)
    same_seq = mask_ref[...] > 0.5                 # (BN, BN) block-diag per-sequence mask

    h = jnp.maximum(mm(x_ref[...], emb_w[...]) + emb_b[...], 0.0)      # (BN, 64)
    for l in range(L):
        a = pb[l]                                                       # (1, 64) proj bias
        for hx in range(H):
            i = l * H + hx
            q = mm(h, qw[i]) + qb[i]                                    # (BN, hd)
            k = mm(h, kw[i]) + kb[i]
            v = mm(h, vw[i]) + vb[i]
            # contract last dims directly (no in-kernel transpose of K)
            s = jax.lax.dot_general(q, k, (((1,), (1,)), ((), ())),
                                    preferred_element_type=f32)         # (BN, BN)
            s = jnp.where(same_seq, s * scale, -1e30)
            s = s - jnp.max(s, axis=-1, keepdims=True)
            p = jnp.exp(s)
            p = p * pl.reciprocal(jnp.sum(p, axis=-1, keepdims=True), approx=True)
            # fold each head's output directly through its slice of the projection
            a = a + mm(mm(p, v), pw[i])                                 # (BN, 64)
        h = layer_norm(h + a, ln1g[l], ln1b[l])
        m = jnp.maximum(mm(h, m0w[l]) + m0b[l], 0.0)
        m = jnp.maximum(mm(m, m1w[l]) + m1b[l], 0.0)
        h = layer_norm(h + m, ln2g[l], ln2b[l])

    # per-sequence mean via averaging matmul (avoids in-kernel reshapes/concats)
    hm = mm(avg_ref[...], h)                                            # (B, 64)
    o_ref[...] = jnp.maximum(mm(hm, ef_w[...]) + ef_b[...], 0.0)


# --------------------------- parameter builders ---------------------------

def init_fc(key, din, dout, scale=0.05):
    k1, k2 = jax.random.split(key)
    return {'w': scale * jax.random.normal(k1, (din, dout), jnp.float32),
            'b': scale * jax.random.normal(k2, (dout,), jnp.float32)}


def init_transformer(key, input_dim):
    keys = jax.random.split(key, 1 + LAYER_NUM)
    params = {'emb': init_fc(keys[0], input_dim, TRANS_OUT), 'layers': []}
    for i in range(LAYER_NUM):
        lk = jax.random.split(keys[1 + i], 4)
        params['layers'].append({
            'attn_pre': init_fc(lk[0], TRANS_OUT, HEAD_DIM * HEAD_NUM * 3),   # qkv proj
            'project': init_fc(lk[1], HEAD_DIM * HEAD_NUM, TRANS_OUT),        # out proj
            'ln1_g': jnp.ones((TRANS_OUT,), jnp.float32),
            'ln1_b': jnp.zeros((TRANS_OUT,), jnp.float32),
            'mlp': [init_fc(lk[2], TRANS_OUT, HIDDEN_DIM),
                    init_fc(lk[3], HIDDEN_DIM, TRANS_OUT)],
            'ln2_g': jnp.ones((TRANS_OUT,), jnp.float32),
            'ln2_b': jnp.zeros((TRANS_OUT,), jnp.float32),
        })
    return params


def init_cum_stat(key, input_dims, output_dim):
    keys = jax.random.split(key, len(input_dims))
    return OrderedDict(
        (k, init_fc(kk, d, output_dim)) for (k, d), kk in zip(input_dims.items(), keys))


def init_bo_encoder(key, input_dim, output_dim):
    k1, k2 = jax.random.split(key)
    return {'transformer': init_transformer(k1, input_dim + BO_SEQ_LEN),
            'embedd_fc': init_fc(k2, TRANS_OUT, output_dim)}


def prepare_bo_kernel_params(p):
    """Restructure BO-encoder weights into per-(layer, head) stacks so the fused
    kernel needs no in-kernel lane slicing or concatenation."""
    t = p['transformer']
    layers = t['layers']
    HH = HEAD_NUM * HEAD_DIM
    row = lambda a: a.reshape(1, -1)

    def head_w(which):   # (L*H, 64, hd)
        return jnp.stack([ly['attn_pre']['w'][:, which * HH + h * HEAD_DIM:
                                              which * HH + (h + 1) * HEAD_DIM]
                          for ly in layers for h in range(HEAD_NUM)], axis=0)

    def head_b(which):   # (L*H, 1, hd)
        return jnp.stack([row(ly['attn_pre']['b'][which * HH + h * HEAD_DIM:
                                                  which * HH + (h + 1) * HEAD_DIM])
                          for ly in layers for h in range(HEAD_NUM)], axis=0)

    return dict(
        emb_w=t['emb']['w'], emb_b=row(t['emb']['b']),
        qw=head_w(0), qb=head_b(0),
        kw=head_w(1), kb=head_b(1),
        vw=head_w(2), vb=head_b(2),
        pw=jnp.stack([ly['project']['w'][h * HEAD_DIM:(h + 1) * HEAD_DIM, :]
                      for ly in layers for h in range(HEAD_NUM)], axis=0),   # (L*H, hd, 64)
        pb=jnp.stack([row(ly['project']['b']) for ly in layers], axis=0),    # (L, 1, 64)
        ln1g=jnp.stack([row(ly['ln1_g']) for ly in layers], axis=0),
        ln1b=jnp.stack([row(ly['ln1_b']) for ly in layers], axis=0),
        m0w=jnp.stack([ly['mlp'][0]['w'] for ly in layers], axis=0),
        m0b=jnp.stack([row(ly['mlp'][0]['b']) for ly in layers], axis=0),
        m1w=jnp.stack([ly['mlp'][1]['w'] for ly in layers], axis=0),
        m1b=jnp.stack([row(ly['mlp'][1]['b']) for ly in layers], axis=0),
        ln2g=jnp.stack([row(ly['ln2_g']) for ly in layers], axis=0),
        ln2b=jnp.stack([row(ly['ln2_b']) for ly in layers], axis=0),
        ef_w=p['embedd_fc']['w'], ef_b=row(p['embedd_fc']['b']),
    )


_BO_ARGS = ('emb_w', 'emb_b', 'qw', 'qb', 'kw', 'kb', 'vw', 'vb', 'pw', 'pb',
            'ln1g', 'ln1b', 'm0w', 'm0b', 'm1w', 'm1b', 'ln2g', 'ln2b', 'ef_w', 'ef_b')


def build_fused_scalar_fc(params, cfg):
    """Pack all small FC encoders into one block-diagonal weight -> single matmul
    with a lane-dense concatenated output."""
    layout = []
    in_tot = out_tot = 0
    for k, item in cfg.items():
        if item['arch'] == 'fc':
            layout.append((k, None, in_tot, item['input_dim'], out_tot, item['output_dim']))
            in_tot += item['input_dim']; out_tot += item['output_dim']
        elif 'cumulative_stat' in k:
            for sk, din in item['input_dim'].items():
                layout.append((k, sk, in_tot, din, out_tot, item['output_dim']))
                in_tot += din; out_tot += item['output_dim']
    w = jnp.zeros((in_tot, out_tot), jnp.float32)
    bs = []
    for (k, sk, ri, din, ci, dout) in layout:
        p = params[k] if sk is None else params[k][sk]
        w = w.at[ri:ri + din, ci:ci + dout].set(p['w'])
        bs.append(p['b'])
    return {'w': w, 'b': jnp.concatenate(bs), 'layout': layout}


# ------------------------------ forward passes -----------------------------

def bo_forward(bo_kern, x):
    """BeginningBuildOrderEncoder: (B, 20, N1) -> (B, output_dim) in ONE pallas_call."""
    B, N, d_in = x.shape
    one_hot = jnp.broadcast_to(jnp.eye(N, dtype=x.dtype)[None], (B, N, N))   # glue
    xc = jnp.concatenate([x, one_hot], axis=2).reshape(B * N, d_in + N)
    # per-sequence attention mask + per-sequence averaging matrix (constant glue)
    ids = jnp.arange(B * N, dtype=jnp.int32) // N
    same_seq = (ids[:, None] == ids[None, :]).astype(jnp.float32)            # (BN, BN)
    avg = (jnp.arange(B, dtype=jnp.int32)[:, None] == ids[None, :]).astype(jnp.float32) / float(N)
    out_dim = bo_kern['ef_w'].shape[1]
    kernel = partial(_bo_kernel, L=LAYER_NUM, H=HEAD_NUM, hd=HEAD_DIM)
    return pl.pallas_call(
        kernel,
        out_shape=jax.ShapeDtypeStruct((B, out_dim), jnp.float32),
    )(xc, same_seq, avg, *[bo_kern[k] for k in _BO_ARGS])


def _present(x, k, sk):
    return (k in x) and (sk is None or sk in x[k])


def fused_scalar_fc_forward(enc, x):
    fused = enc['fused_fc']
    layout = fused['layout']
    if all(_present(x, k, sk) for (k, sk, *_r) in layout):
        xin = jnp.concatenate([x[k] if sk is None else x[k][sk]
                               for (k, sk, *_r) in layout], axis=1)
        y = fc(xin, fused['w'], fused['b'], relu=True)                       # one launch
        return {(k if sk is None else (k, sk)): y[:, ci:ci + dout]
                for (k, sk, ri, din, ci, dout) in layout}
    # Fallback: some inputs absent -> per-entry fc (still correct, more launches).
    outs = {}
    for (k, sk, ri, din, ci, dout) in layout:
        if not _present(x, k, sk):
            continue
        p = enc['params'][k] if sk is None else enc['params'][k][sk]
        xi = x[k] if sk is None else x[k][sk]
        outs[k if sk is None else (k, sk)] = fc(xi, p['w'], p['b'], relu=True)
    return outs


def make_cfg():
    cum_dims = OrderedDict([('unit_build', 30), ('effect', 20), ('research', 10)])
    return OrderedDict([
        ('agent_statistics', dict(arch='fc', input_dim=10, output_dim=64, baseline_feature=True)),
        ('race', dict(arch='fc', input_dim=5, output_dim=32, scalar_context=True)),
        ('enemy_race', dict(arch='fc', input_dim=5, output_dim=32, scalar_context=True)),
        ('time', dict(arch='identity', input_dim=32, output_dim=32)),
        ('cumulative_stat', dict(arch='cumulative_stat', input_dim=cum_dims, output_dim=32,
                                 scalar_context=True, baseline_feature=True)),
        ('immediate_cumulative_stat', dict(arch='cumulative_stat', input_dim=cum_dims,
                                           output_dim=32)),
        ('beginning_build_order', dict(arch='beginning_build_order', input_dim=20, output_dim=32,
                                       scalar_context=True, baseline_feature=True)),
    ])


def init_scalar_encoder(key, cfg):
    params = OrderedDict()
    keys = jax.random.split(key, len(cfg))
    for (k, item), kk in zip(cfg.items(), keys):
        if item['arch'] == 'fc':
            params[k] = init_fc(kk, item['input_dim'], item['output_dim'])
        elif item['arch'] == 'identity':
            params[k] = None
        elif 'cumulative_stat' in k:
            params[k] = init_cum_stat(kk, item['input_dim'], item['output_dim'])
        elif 'beginning_build_order' in k:
            params[k] = init_bo_encoder(kk, item['input_dim'], item['output_dim'])
        else:
            raise NotImplementedError(k)
    return {'cfg': cfg, 'params': params,
            'fused_fc': build_fused_scalar_fc(params, cfg),
            'bo_kern': prepare_bo_kernel_params(params['beginning_build_order'])}


def scalar_encoder_forward(enc, x):
    cfg = enc['cfg']
    fc_outs = fused_scalar_fc_forward(enc, x)
    embedded_scalar, scalar_context, baseline_feature = [], [], []
    cum_stat_data, immediate_cum_stat_data = None, None
    for key, item in cfg.items():
        if key not in x:
            continue
        if item['arch'] == 'fc':
            emb = fc_outs[key]
        elif item['arch'] == 'identity':
            emb = x[key]
        elif 'cumulative_stat' in key:
            data = OrderedDict((sk, fc_outs[(key, sk)]) for sk in item['input_dim']
                               if (key, sk) in fc_outs)
            emb = jnp.concatenate(list(data.values()), axis=1)
            if 'immediate' in key:
                immediate_cum_stat_data = data
            else:
                cum_stat_data = data
        elif 'beginning_build_order' in key:
            emb = bo_forward(enc['bo_kern'], x[key])
        else:
            raise NotImplementedError(key)
        if 'immediate' in key:   # computed but excluded from all concats (matches reference)
            continue
        embedded_scalar.append(emb)
        if item.get('scalar_context', False):
            scalar_context.append(emb)
        if item.get('baseline_feature', False):
            baseline_feature.append(emb)
    return (jnp.concatenate(embedded_scalar, axis=1),
            jnp.concatenate(scalar_context, axis=1),
            jnp.concatenate(baseline_feature, axis=1),
            cum_stat_data, immediate_cum_stat_data)


# ----------------------------------- main -----------------------------------

if __name__ == "__main__":
    cfg = make_cfg()
    root = jax.random.PRNGKey(0)
    pkey, dkey = jax.random.split(root)
    enc = init_scalar_encoder(pkey, cfg)

    B = 2
    dks = jax.random.split(dkey, 11)
    x = OrderedDict([
        ('agent_statistics', jax.random.normal(dks[0], (B, 10), jnp.float32)),
        ('race', jax.random.normal(dks[1], (B, 5), jnp.float32)),
        ('enemy_race', jax.random.normal(dks[2], (B, 5), jnp.float32)),
        ('time', jax.random.normal(dks[3], (B, 32), jnp.float32)),
        ('cumulative_stat', OrderedDict([
            ('unit_build', jax.random.normal(dks[4], (B, 30), jnp.float32)),
            ('effect', jax.random.normal(dks[5], (B, 20), jnp.float32)),
            ('research', jax.random.normal(dks[6], (B, 10), jnp.float32)),
        ])),
        ('immediate_cumulative_stat', OrderedDict([
            ('unit_build', jax.random.normal(dks[7], (B, 30), jnp.float32)),
            ('effect', jax.random.normal(dks[8], (B, 20), jnp.float32)),
            ('research', jax.random.normal(dks[9], (B, 10), jnp.float32)),
        ])),
        ('beginning_build_order', jax.random.normal(dks[10], (B, BO_SEQ_LEN, 20), jnp.float32)),
    ])

    out = scalar_encoder_forward(enc, x)
    embedded_scalar, scalar_context, baseline_feature, cum_data, imm_data = out
    jax.block_until_ready((embedded_scalar, scalar_context, baseline_feature))

    assert embedded_scalar.shape == (B, 64 + 32 + 32 + 32 + 3 * 32 + 32)
    assert scalar_context.shape == (B, 32 + 32 + 3 * 32 + 32)
    assert baseline_feature.shape == (B, 64 + 3 * 32 + 32)
    assert set(cum_data.keys()) == {'unit_build', 'effect', 'research'}
    assert set(imm_data.keys()) == {'unit_build', 'effect', 'research'}
    assert all(v.shape == (B, 32) for v in cum_data.values())
    assert all(v.shape == (B, 32) for v in imm_data.values())
    print("KERNEL_OK")
</pallas_src>

<mosaic_0001>
module attributes {stable_mosaic.version = 11 : i64} {
  func.func @_fc_kernel(%arg0: memref<2x140xf32, #tpu.memory_space<vmem>>, %arg1: memref<140x320xf32, #tpu.memory_space<vmem>>, %arg2: memref<1x320xf32, #tpu.memory_space<vmem>>, %arg3: memref<2x320xf32, #tpu.memory_space<vmem>>) attributes {dimension_semantics = [], scalar_prefetch = 0 : i64, scratch_operands = 0 : i64, tpu.core_type = #tpu.core_type<tc>} {
    %c0 = arith.constant 0 : index
    %c0_0 = arith.constant 0 : index
    %0 = vector.load %arg0[%c0, %c0_0] : memref<2x140xf32, #tpu.memory_space<vmem>>, vector<2x140xf32>
    %c0_1 = arith.constant 0 : index
    %c0_2 = arith.constant 0 : index
    %1 = vector.load %arg1[%c0_1, %c0_2] : memref<140x320xf32, #tpu.memory_space<vmem>>, vector<140x320xf32>
    %cst = arith.constant dense<0.000000e+00> : vector<2x320xf32>
    %2 = tpu.matmul %0, %1, %cst {dimension_numbers = #tpu.dot_dimension_numbers<[1], [0], [0], [1], [0, 0, 1, 1], [], []>} : vector<2x140xf32>, vector<140x320xf32>, vector<2x320xf32> -> vector<2x320xf32>
    %c0_3 = arith.constant 0 : index
    %c0_4 = arith.constant 0 : index
    %3 = vector.load %arg2[%c0_3, %c0_4] : memref<1x320xf32, #tpu.memory_space<vmem>>, vector<1x320xf32>
    %4 = vector.broadcast %3 : vector<1x320xf32> to vector<2x320xf32>
    %5 = arith.addf %2, %4 : vector<2x320xf32>
    %cst_5 = arith.constant 0.000000e+00 : f32
    %6 = vector.broadcast %cst_5 : f32 to vector<2x320xf32>
    %7 = arith.maximumf %5, %6 : vector<2x320xf32>
    %c0_6 = arith.constant 0 : index
    %c0_7 = arith.constant 0 : index
    %8 = vector.load %arg3[%c0_6, %c0_7] : memref<2x320xf32, #tpu.memory_space<vmem>>, vector<2x320xf32>
    tpu.vector_store %arg3[%c0_6, %c0_7], %7 {strides = array<i32>} : memref<2x320xf32, #tpu.memory_space<vmem>>, vector<2x320xf32>,
    return
  }
}

</mosaic_0001>

<bundles_post_ra>
// kernel: tpu_custom_call.1
= control target key start
LH: loop header
LB: loop body
LE: loop exit
PB: predicated region body
PF: predicated region fallthrough
CT: control target
= control target key end

     0   :  { %8 = vsyncpa [#allocation3], 0  ;;  %s455_s0 = inlined_call_operand.hbm [shape: f32[2,140], index: 0, kind: input, shape index: {}]   ;;  %s456_s1 = inlined_call_operand.hbm [shape: f32[140,320], index: 1, kind: input, shape index: {}]   ;;  %s457_s2 = inlined_call_operand.hbm [shape: f32[1,320], index: 2, kind: input, shape index: {}]   ;;  %s458_s3 = inlined_call_operand.hbm [shape: f32[2,320], index: 3, kind: output, shape index: {}]  }
   0x1   :  { %9 = vsyncpa [#allocation6], 0  ;;  %s26_s14 = sshll.u32 %s456_s1, 4  ;;  %s27_s14 = int_to_ptr.hbm [resolvable:$true] %s26_s14 }
   0x2   :  { %10 = vsyncpa [#allocation4], 0  ;;  %s408_s15 = smov [#allocation5]   ;;  %s16_s19 = sshll.u32 %s455_s0, 4  ;;  %s17_s19 = int_to_ptr.hbm [resolvable:$true] %s16_s19 }
   0x3   :  { %s28_s16 = sshll.u32 %s408_s15, 4  ;;  %s409_s20 = smov 384   ;;  %s29_s16 = int_to_ptr.vmem [resolvable:$true] %s28_s16 }
   0x4   :  { %s410_s21 = smov 24   ;;  %s411_s22 = smov [#allocation2]  }
   0x5   :  { %34 = dma.hbm_to_vmem [thread:$0]  %s27_s14, 6912, %s29_s16, [#allocation6], %s409_s20, %s409_s20, %s410_s21  }
   0x6   :  { %s18_s23 = sshll.u32 %s411_s22, 4  ;;  %s40_s26 = sshll.u32 %s457_s2, 4  ;;  %s19_s23 = int_to_ptr.vmem [resolvable:$true] %s18_s23  ;;  %s41_s26 = int_to_ptr.hbm [resolvable:$true] %s40_s26 }
   0x7   :  { %21 = dma.hbm_to_vmem [thread:$0]  %s17_s19, 64, %s19_s23, [#allocation3]  }
   0x8   :  { %s412_s1 = smov [#allocation7]  }
   0x9   :  { %s42_s27 = sshll.u32 %s412_s1, 4  ;;  %s43_s27 = int_to_ptr.vmem [resolvable:$true] %s42_s27 }
   0xa   :  { %45 = dma.hbm_to_vmem [thread:$0]  %s41_s26, 48, %s43_s27, [#allocation6]  }
   0xb   :  { %402 = dma.done.wait [#allocation3], 64  }
   0xc   :  { %403 = vsyncadd [#allocation3], 4294967232 }
   0xd   :  { %404 = dma.done.wait [#allocation6], 6960  }
   0xe   :  { %405 = vsyncadd [#allocation6], 4294960336  ;;  %v104_v0 = vld [vmem:[#allocation5 + $0x168] sm:$0xff]  ;;  %v105_v1 = vld [vmem:[#allocation5 + $0x170] sm:$0xff]  ;;  %vm129_vm0 = vcmask 1043456   ;;  %vm126_vm1 = vcmask 97280  }
   0xf   :  { %v101_v2 = vld [vmem:[#allocation5 + $0x150] sm:$0xff]  ;;  %139 = vmatpush.msra.mxu0 %v104_v0  ;;  %179 = vmatpush.msra.mxu2 %v105_v1  ;;  %v102_v3 = vld [vmem:[#allocation5 + $0x158] sm:$0xff]  ;;  %v99_v5 = vld [vmem:[#allocation5 + $0x140] sm:$0xff]  ;;  %vm267_vm2 = vcmask 1041408   ;;  %vm271_vm3 = vcmask 1043458   ;;  %vm273_vm5 = vcmask 521220  }
  0x10   :  { %v98_v4 = vld [vmem:[#allocation5 + $0x138] sm:$0xff]  ;;  %v103_v7 = vld [vmem:[#allocation5 + $0x160] sm:$0xff]  ;;  %v96_v9 = vld [vmem:[#allocation5 + $0x128] sm:$0xff]  ;;  %s413_s0 = smov [#allocation8]   ;;  %s283_s30 = sshll.u32 %s458_s3, 4  ;;  %s284_s30 = int_to_ptr.hbm [resolvable:$true] %s283_s30 }
  0x11   :  { %v106_v6 = vld [vmem:[#allocation5 + $0x178] sm:$0xff]  ;;  %140 = vmatpush.msra.mxu0 %v101_v2  ;;  %180 = vmatpush.msra.mxu2 %v102_v3  ;;  %v95_v8 = vld [vmem:[#allocation5 + $0x120] sm:$0xff]  ;;  %v100_v10 = vld [vmem:[#allocation5 + $0x148] sm:$0xff]  ;;  %s281_s2 = sshll.u32 %s413_s0, 4  ;;  %s282_s2 = int_to_ptr.vmem [resolvable:$true] %s281_s2 }
  0x12   :  { %219 = vmatpush.msra.mxu1 %v106_v6  ;;  %v92_v11 = vld [vmem:[#allocation5 + $0x108] sm:$0xff]  ;;  %v93_v12 = vld [vmem:[#allocation5 + $0x110] sm:$0xff]  ;;  %v110_v13 = vld [vmem:[#allocation5 + $0x198] sm:$0xf] }
  0x13   :  { %141 = vmatpush.msra.mxu0 %v98_v4  ;;  %181 = vmatpush.msra.mxu2 %v99_v5  ;;  %v97_v14 = vld [vmem:[#allocation5 + $0x130] sm:$0xff]  ;;  %v90_v16 = vld [vmem:[#allocation5 + $0xf8] sm:$0xff]  ;;  %v107_v17 = vld [vmem:[#allocation5 + $0x180] sm:$0xff] }
  0x14   :  { %220 = vmatpush.msra.mxu1 %v103_v7  ;;  %v89_v15 = vld [vmem:[#allocation5 + $0xf0] sm:$0xff]  ;;  %294 = vmatpush.msk.msra.mxu3 %vm129_vm0, %v110_v13  ;;  %v94_v18 = vld [vmem:[#allocation5 + $0x118] sm:$0xff]  ;;  %v111_v20 = vld [vmem:[#allocation5 + $0x1a0] sm:$0xf] }
  0x15   :  { %142 = vmatpush.msra.mxu0 %v95_v8  ;;  %182 = vmatpush.msra.mxu2 %v96_v9  ;;  %v58_v19 = vld [vmem:[#allocation2] sm:$0xf]  ;;  %v87_v22 = vld [vmem:[#allocation5 + $0xe0] sm:$0xff]  ;;  %v84_v25 = vld [vmem:[#allocation5 + $0xc8] sm:$0xff] }
  0x16   :  { %221 = vmatpush.msra.mxu1 %v100_v10  ;;  %v86_v21 = vld [vmem:[#allocation5 + $0xd8] sm:$0xff]  ;;  %174 = vmatpush.msra.mxu3 %v107_v17  ;;  %122 = vst [vmem:[#allocation1] ss:$4 sm:$0xff] %v58_v19  ;;  %v91_v23 = vld [vmem:[#allocation5 + $0x100] sm:$0xff]  ;;  %v108_v26 = vld [vmem:[#allocation5 + $0x188] sm:$0xff] }
  0x17   :  { %143 = vmatpush.msra.mxu0 %v92_v11  ;;  %183 = vmatpush.msra.mxu2 %v93_v12  ;;  %v83_v24 = vld [vmem:[#allocation5 + $0xc0] sm:$0xff]  ;;  %v88_v27 = vld [vmem:[#allocation5 + $0xe8] sm:$0xff]  ;;  %v81_v29 = vld [vmem:[#allocation5 + $0xb0] sm:$0xff] }
  0x18   :  { %222 = vmatpush.msra.mxu1 %v97_v14  ;;  %296 = vmatpush.msk.msrb.mxu3 %vm129_vm0, %v111_v20  ;;  %v80_v28 = vld [vmem:[#allocation5 + $0xa8] sm:$0xff]  ;;  %v85_v30 = vld [vmem:[#allocation5 + $0xd0] sm:$0xff]  ;;  %v78_v32 = vld [vmem:[#allocation5 + $0x98] sm:$0xff] }
  0x19   :  { %144 = vmatpush.msra.mxu0 %v89_v15  ;;  %184 = vmatpush.msra.mxu2 %v90_v16  ;;  %v77_v31 = vld [vmem:[#allocation5 + $0x90] sm:$0xff]  ;;  %v82_v34 = vld [vmem:[#allocation5 + $0xb8] sm:$0xff]  ;;  %v112_v35 = vld [vmem:[#allocation5 + $0x1a8] sm:$0xf] }
  0x1a   :  { %223 = vmatpush.msra.mxu1 %v94_v18  ;;  %214 = vmatpush.msrb.mxu3 %v108_v26  ;;  %v74_v36 = vld [vmem:[#allocation5 + $0x78] sm:$0xff]  ;;  %v75_v37 = vld [vmem:[#allocation5 + $0x80] sm:$0xff]  ;;  %v109_v39 = vld [vmem:[#allocation5 + $0x190] sm:$0xff] }
  0x1b   :  { %145 = vmatpush.msra.mxu0 %v86_v21  ;;  %185 = vmatpush.msra.mxu2 %v87_v22  ;;  %v79_v38 = vld [vmem:[#allocation5 + $0xa0] sm:$0xff]  ;;  %v72_v41 = vld [vmem:[#allocation5 + $0x68] sm:$0xff]  ;;  %v69_v44 = vld [vmem:[#allocation5 + $0x50] sm:$0xff] }
  0x1c   :  { %224 = vmatpush.msra.mxu1 %v91_v23  ;;  %v71_v40 = vld [vmem:[#allocation5 + $0x60] sm:$0xff]  ;;  %v76_v42 = vld [vmem:[#allocation5 + $0x88] sm:$0xff]  ;;  %v73_v45 = vld [vmem:[#allocation5 + $0x70] sm:$0xff] }
  0x1d   :  { %146 = vmatpush.msra.mxu0 %v83_v24  ;;  %186 = vmatpush.msra.mxu2 %v84_v25  ;;  %v124_v33 = vld.sshfl [vmem:[#allocation1 + $0x8] sm:$0xff pattern:$0x73625140]  ;;  %v68_v43 = vld [vmem:[#allocation5 + $0x48] sm:$0xff]  ;;  %v65_v46 = vld [vmem:[#allocation5 + $0x30] sm:$0xff] }
  0x1e   :  { %225 = vmatpush.msra.mxu1 %v88_v27  ;;  %295 = vmatmul.msk.f32.vlgmr.msra.gmra.mxu3 %vm126_vm1, %v124_v33  ;;  %v66_v47 = vld [vmem:[#allocation5 + $0x38] sm:$0xff]  ;;  %v63_v50 = vld [vmem:[#allocation5 + $0x20] sm:$0xff]  ;;  %v60_v53 = vld [vmem:[#allocation5 + $0x8] sm:$0xff] }
  0x1f   :  { %147 = vmatpush.msra.mxu0 %v80_v28  ;;  %187 = vmatpush.msra.mxu2 %v81_v29  ;;  %v70_v48 = vld [vmem:[#allocation5 + $0x58] sm:$0xff]  ;;  %v67_v51 = vld [vmem:[#allocation5 + $0x40] sm:$0xff]  ;;  %v64_v55 = vld [vmem:[#allocation5 + $0x28] sm:$0xff] }
  0x20   :  { %226 = vmatpush.msra.mxu1 %v85_v30  ;;  %298 = vmatpush.msk.msra.mxu3 %vm129_vm0, %v112_v35  ;;  %v62_v49 = vld [vmem:[#allocation5 + $0x18] sm:$0xff]  ;;  %v59_v52 = vld [vmem:[#allocation5] sm:$0xff]  ;;  %v61_v56 = vld [vmem:[#allocation5 + $0x10] sm:$0xff] }
  0x21   :  { %148 = vmatpush.msra.mxu0 %v77_v31  ;;  %188 = vmatpush.msra.mxu2 %v78_v32  ;;  %v123_v54 = vld.sshfl [vmem:[#allocation1] sm:$0xff pattern:$0x73625140]  ;;  %v113_v58 = vld [vmem:[#allocation7] sm:$0x7]  ;;  %vm272_vm4 = vmor %vm271_vm3, %vm267_vm2 }
  0x22   :  { %227 = vmatpush.msra.mxu1 %v82_v34  ;;  %254 = vmatpush.msra.mxu3 %v109_v39  ;;  %v115_v60 = vperm.slane %v113_v58, 0  ;;  %v117_v61 = vperm.slane %v113_v58, 2  ;;  %v116_v63 = vperm.slane %v113_v58, 1  ;;  %vm274_vm6 = vmor %vm273_vm5, %vm272_vm4 }
  0x23   :  { %149 = vmatpush.msra.mxu0 %v74_v36  ;;  %189 = vmatpush.msra.mxu2 %v75_v37 }
  0x24   :  { %228 = vmatpush.msra.mxu1 %v79_v38 }
  0x25   :  { %150 = vmatpush.msra.mxu0 %v71_v40  ;;  %190 = vmatpush.msra.mxu2 %v72_v41 }
  0x26   :  { %229 = vmatpush.msra.mxu1 %v76_v42  ;;  %297 = vmatmul.msk.f32.vlgmr.msrb.gmra.mxu3 %vm126_vm1, %v124_v33 }
  0x27   :  { %151 = vmatpush.msra.mxu0 %v68_v43  ;;  %191 = vmatpush.msra.mxu2 %v69_v44 }
  0x28   :  { %230 = vmatpush.msra.mxu1 %v73_v45 }
  0x29   :  { %152 = vmatpush.msra.mxu0 %v65_v46  ;;  %192 = vmatpush.msra.mxu2 %v66_v47 }
  0x2a   :  { %231 = vmatpush.msra.mxu1 %v70_v48 }
  0x2b   :  { %153 = vmatpush.msra.mxu0 %v62_v49  ;;  %193 = vmatpush.msra.mxu2 %v63_v50 }
  0x2c   :  { %232 = vmatpush.msra.mxu1 %v67_v51 }
  0x2d   :  { %154 = vmatpush.msra.mxu0 %v59_v52  ;;  %194 = vmatpush.msra.mxu2 %v60_v53 }
  0x2e   :  { %155 = vmatmul.f32.vlgmr.msra.gmra.mxu0 %v123_v54  ;;  %195 = vmatmul.f32.vlgmr.msra.gmra.mxu2 %v123_v54 }
  0x2f   :  { %233 = vmatpush.msra.mxu1 %v64_v55  ;;  %299 = vmatmul.msk.f32.vlgmr.msra.gmra.mxu3 %vm126_vm1, %v124_v33 }
  0x31   :  { %234 = vmatpush.msra.mxu1 %v61_v56 }
  0x32   :  { %235 = vmatmul.f32.vlgmr.msra.gmra.mxu1 %v123_v54 }
  0xa1   :  { %v176_v57 = vpop.f32.mrf.mxu3 }
  0xa9   :  { %v216_v59 = vpop.f32.mrf.mxu3 }
  0xab   :  { %v156_v62 = vpop.f32.mrf.mxu0 }
  0xac   :  { %v157_v1 = vadd.f32 %v156_v62, %v115_v60 }
  0xae   :  { %v177_v6 = vadd.f32 %v176_v57, %v157_v1 }
  0xaf   :  { %v236_v0 = vpop.f32.mrf.mxu1 }
  0xb0   :  { %v237_v2 = vadd.f32 %v236_v0, %v117_v61  ;;  %v259_v11 = vmax.f32 %v177_v6, 0.0 }
  0xb1   :  { %v196_v3 = vpop.f32.mrf.mxu2 }
  0xb2   :  { %v197_v4 = vadd.f32 %v196_v3, %v116_v63  ;;  %v256_v5 = vpop.f32.mrf.mxu3 }
  0xb3   :  { %v257_v8 = vadd.f32 %v256_v5, %v237_v2 }
  0xb4   :  { %v217_v7 = vadd.f32 %v216_v59, %v197_v4 }
  0xb5   :  { %v261_v10 = vmax.f32 %v257_v8, 0.0 }
  0xb6   :  { %v260_v9 = vmax.f32 %v217_v7, 0.0 }
  0xb7   :  { %v266_v13 = vrot.slane %v261_v10, 4 }
  0xb8   :  { %v265_v12 = vrot.slane %v260_v9, 6 }
  0xba   :  { %v268_v14 = vsel %vm267_vm2, %v259_v11, %v265_v12 }
  0xbb   :  { %v269_v15 = vsel %vm129_vm0, %v268_v14, %v266_v13 }
  0xbc   :  { %275 = vst.msk [vmem:[#allocation8] sm:$0x3f] %vm274_vm6, %v269_v15 }
  0xbd   :  { %286 = dma.vmem_to_hbm [thread:$0]  %s282_s2, 96, %s284_s30, [#allocation4]  }
  0xbe   :  { %406 = dma.done.wait [#allocation4], 96  }
  0xbf   :  { %407 = vsyncadd [#allocation4], 4294967200 }
  0xc0   :  { %291 = vsyncpa [#allocation3], 1 }
  0xc1   :  { %292 = vsyncpa [#allocation6], 1 }
  0xc2   :  { %293 = vsyncpa [#allocation4], 1 }

</bundles_post_ra>
